<compile_context>
chip_gen: v7x
topology: tpu7x:2x2x1
jax: 0.10.0
libtpu: 0.0.40
codegen_flags: <defaults>
</compile_context>

<pallas_src>
import functools
import math

import jax
import jax.numpy as jnp
from jax.experimental import pallas as pl
from jax.experimental.pallas import tpu as pltpu


# ----------------------------------------------------------------------------
# Kernels
# ----------------------------------------------------------------------------
def _masked_resident_kernel(x_ref, m_ref, o_ref):
    """Lane-dense path.

    x_ref/o_ref: (block_rows, 128) tile of the flattened view of x.
    m_ref:       (block_rows, 128) precomputed tril-mask tile; identical for
                 every grid step (constant index_map => stays resident in VMEM).
    x * mask (not `where`) keeps PyTorch's NaN/Inf propagation semantics.
    """
    o_ref[...] = x_ref[...] * m_ref[...]


def _masked_bhkk_kernel(x_ref, o_ref, *, rk: int):
    """Fallback path for very large / awkward k.

    x_ref/o_ref: (G, rk, k) tile of the (B*H, k, k) view.  Mask is generated
    with two iotas and one compare (no div/mod -> cheap VPU work hidden under
    the DMA).
    """
    row0 = pl.program_id(1) * rk
    row = row0 + jax.lax.broadcasted_iota(jnp.int32, x_ref.shape, 1)
    col = jax.lax.broadcasted_iota(jnp.int32, x_ref.shape, 2)
    o_ref[...] = x_ref[...] * (col <= row).astype(x_ref.dtype)


# ----------------------------------------------------------------------------
# Wrapper
# ----------------------------------------------------------------------------
_TARGET_BLOCK_BYTES = 4 * 1024 * 1024   # ~4 MiB blocks: amortize step overhead,
                                        # double-buffered in+out+mask < 32 MiB.
_MAX_UNIT_BYTES = 4 * 1024 * 1024       # cap on the (8x128, k*k) alignment unit.


def _round_up(a: int, m: int) -> int:
    return ((a + m - 1) // m) * m


def masked_forward(x: jax.Array) -> jax.Array:
    """x: (B, H, k, k) -> x * tril(ones(k, k)), broadcast over (B, H)."""
    B, H, k1, k2 = x.shape
    assert k1 == k2, "Masked expects square (k, k) trailing dims"
    k = k1
    kk = k * k
    N = B * H * kk
    itemsize = jnp.dtype(x.dtype).itemsize

    # Smallest element count that is a multiple of both one (8, 128) row slab
    # (1024 elems) and one (k, k) matrix: blocks sized in multiples of this
    # always start on a matrix boundary, so one precomputed mask tile is valid
    # for every grid step.
    unit_elems = (1024 * kk) // math.gcd(1024, kk)   # lcm(1024, k*k)
    unit_rows = unit_elems // 128
    unit_bytes = unit_elems * itemsize

    if unit_bytes <= _MAX_UNIT_BYTES:
        # ------------------ lane-dense resident-mask path -------------------
        xf = x.reshape(-1)
        pad = (-N) % 128
        if pad:
            xf = jnp.pad(xf, (0, pad))
        R = (N + pad) // 128
        xf = xf.reshape(R, 128)

        if R < unit_rows:
            # Tiny input: single block covering the full array (always legal).
            block_rows = R
        else:
            budget_rows = max(
                unit_rows,
                ((_TARGET_BLOCK_BYTES // (128 * itemsize)) // unit_rows) * unit_rows,
            )
            # Keep >= 2 grid steps whenever the shape allows (v7x megacore).
            half_rows = _round_up(pl.cdiv(R, 2), unit_rows)
            block_rows = max(unit_rows, min(budget_rows, half_rows))
        num_blocks = pl.cdiv(R, block_rows)   # ragged last block is fine.

        # Resident mask tile: first block_rows*128 elements of the repeating
        # flattened tril pattern (every block starts at a multiple of k*k).
        block_elems = block_rows * 128
        reps = pl.cdiv(block_elems, kk)
        tril_flat = jnp.tril(jnp.ones((k, k), dtype=x.dtype)).reshape(-1)
        mask_tile = jnp.tile(tril_flat, reps)[:block_elems].reshape(block_rows, 128)

        out = pl.pallas_call(
            _masked_resident_kernel,
            out_shape=jax.ShapeDtypeStruct((R, 128), x.dtype),
            grid_spec=pltpu.PrefetchScalarGridSpec(
                num_scalar_prefetch=0,
                grid=(num_blocks,),
                in_specs=[
                    pl.BlockSpec((block_rows, 128), lambda i: (i, 0)),
                    pl.BlockSpec((block_rows, 128), lambda i: (0, 0)),  # resident
                ],
                out_specs=pl.BlockSpec((block_rows, 128), lambda i: (i, 0)),
            ),
            compiler_params=pltpu.CompilerParams(
                dimension_semantics=("parallel",),
                vmem_limit_bytes=64 << 20,
            ),
        )(xf, mask_tile)

        out = out.reshape(-1)
        if pad:
            out = out[:N]
        return out.reshape(B, H, k, k)

    # ---------------- fallback: (B*H, k, k), iota mask in-kernel -------------
    BH = B * H
    mat_bytes = kk * itemsize
    if mat_bytes <= _TARGET_BLOCK_BYTES:
        rk = k
        G = max(1, _TARGET_BLOCK_BYTES // mat_bytes)
        G = min(G, max(1, pl.cdiv(BH, 2)))   # >= 2 grid steps when BH > 1
    else:
        # Single huge matrix per block would blow VMEM: block the row dim.
        G = 1
        rows_budget = max(8, ((_TARGET_BLOCK_BYTES // (k * itemsize)) // 8) * 8)
        rk = rows_budget if rows_budget < k else k
    grid = (pl.cdiv(BH, G), pl.cdiv(k, rk))

    xr = x.reshape(BH, k, k)
    out = pl.pallas_call(
        functools.partial(_masked_bhkk_kernel, rk=rk),
        out_shape=jax.ShapeDtypeStruct((BH, k, k), x.dtype),
        grid_spec=pltpu.PrefetchScalarGridSpec(
            num_scalar_prefetch=0,
            grid=grid,
            in_specs=[pl.BlockSpec((G, rk, k), lambda i, j: (i, j, 0))],
            out_specs=pl.BlockSpec((G, rk, k), lambda i, j: (i, j, 0)),
        ),
        compiler_params=pltpu.CompilerParams(
            dimension_semantics=("parallel", "parallel"),
            vmem_limit_bytes=64 << 20,
        ),
    )(xr)
    return out.reshape(B, H, k, k)


def make_mask(k: int, dtype=jnp.float32) -> jax.Array:
    """Deterministic parameter init (reference only): tril ones, (1, 1, k, k)."""
    return jnp.tril(jnp.ones((k, k), dtype=dtype)).reshape(1, 1, k, k)


if __name__ == "__main__":
    key = jax.random.PRNGKey(0)

    # Primary case: aligned shapes (lane-dense resident-mask path).
    B, H, k = 2, 4, 16
    x = jax.random.normal(key, (B, H, k, k), dtype=jnp.float32)
    out = jax.block_until_ready(masked_forward(x))
    ref = x * make_mask(k, dtype=x.dtype)
    assert out.shape == x.shape and out.dtype == x.dtype
    assert jnp.allclose(out, ref), "mismatch vs reference (aligned path)"

    # Unaligned case (total elements not a multiple of 128): padded flat path.
    x2 = jax.random.normal(jax.random.PRNGKey(0), (2, 3, 10, 10), dtype=jnp.float32)
    out2 = jax.block_until_ready(masked_forward(x2))
    ref2 = x2 * make_mask(10, dtype=x2.dtype)
    assert jnp.allclose(out2, ref2), "mismatch vs reference (padded path)"

    # Awkward k (alignment unit too large): (B*H, k, k) iota-mask fallback.
    x3 = jax.random.normal(jax.random.PRNGKey(0), (1, 2, 33, 33), dtype=jnp.float32)
    out3 = jax.block_until_ready(masked_forward(x3))
    ref3 = x3 * make_mask(33, dtype=x3.dtype)
    assert jnp.allclose(out3, ref3), "mismatch vs reference (fallback path)"

    print("KERNEL_OK")
</pallas_src>

<mosaic_0001>
module attributes {stable_mosaic.version = 11 : i64} {
  func.func @_masked_resident_kernel(%arg0: i32, %arg1: memref<8x128xf32, #tpu.memory_space<vmem>>, %arg2: memref<8x128xf32, #tpu.memory_space<vmem>>, %arg3: memref<8x128xf32, #tpu.memory_space<vmem>>) attributes {dimension_semantics = [#tpu.dimension_semantics<parallel>], iteration_bounds = array<i64: 2>, scalar_prefetch = 0 : i64, scratch_operands = 0 : i64, tpu.core_type = #tpu.core_type<tc>, window_params = [{transform_indices = @transform_0, window_bounds = array<i64: 8, 128>}, {pipeline_mode = #tpu.pipeline_mode<synchronous>, transform_indices = @transform_1, window_bounds = array<i64: 8, 128>}, {transform_indices = @transform_2, window_bounds = array<i64: 8, 128>}]} {
    %c0 = arith.constant 0 : index
    %c0_0 = arith.constant 0 : index
    %0 = vector.load %arg1[%c0, %c0_0] : memref<8x128xf32, #tpu.memory_space<vmem>>, vector<8x128xf32>
    %c0_1 = arith.constant 0 : index
    %c0_2 = arith.constant 0 : index
    %1 = vector.load %arg2[%c0_1, %c0_2] : memref<8x128xf32, #tpu.memory_space<vmem>>, vector<8x128xf32>
    %2 = arith.mulf %0, %1 : vector<8x128xf32>
    %c0_3 = arith.constant 0 : index
    %c0_4 = arith.constant 0 : index
    %3 = vector.load %arg3[%c0_3, %c0_4] : memref<8x128xf32, #tpu.memory_space<vmem>>, vector<8x128xf32>
    tpu.vector_store %arg3[%c0_3, %c0_4], %2 {strides = array<i32>} : memref<8x128xf32, #tpu.memory_space<vmem>>, vector<8x128xf32>,
    return
  }
  func.func @transform_0(%arg0: i32) -> (i32, i32) {
    %c0_i32 = arith.constant 0 : i32
    %c0_i32_0 = arith.constant 0 : i32
    return %arg0, %c0_i32 : i32, i32
  }
  func.func @transform_1(%arg0: i32) -> (i32, i32) {
    %c0_i32 = arith.constant 0 : i32
    %c0_i32_0 = arith.constant 0 : i32
    %c0_i32_1 = arith.constant 0 : i32
    return %c0_i32, %c0_i32_0 : i32, i32
  }
  func.func @transform_2(%arg0: i32) -> (i32, i32) {
    %c0_i32 = arith.constant 0 : i32
    %c0_i32_0 = arith.constant 0 : i32
    return %arg0, %c0_i32 : i32, i32
  }
}

</mosaic_0001>

<bundles_post_ra>
// kernel: tpu_custom_call.1
= control target key start
LH: loop header
LB: loop body
LE: loop exit
PB: predicated region body
PF: predicated region fallthrough
CT: control target
= control target key end

     0   :  { %7 = vsyncpa [#allocation3], 0  ;;  %s690_s0 = inlined_call_operand.hbm [shape: f32[16,128], index: 0, kind: input, shape index: {}]   ;;  %s691_s1 = inlined_call_operand.hbm [shape: f32[8,128], index: 1, kind: input, shape index: {}]   ;;  %s692_s2 = inlined_call_operand.hbm [shape: f32[16,128], index: 2, kind: output, shape index: {}]  }
   0x1   :  { %9 = vsyncpa [#allocation3 + $0x1], 0 }
   0x2   :  { %10 = vsyncpa [#allocation6], 0 }
   0x3   :  { %11 = vsyncpa [#allocation4], 0 }
   0x4   :  { %13 = vsyncpa [#allocation4 + $0x1], 0  ;;  %s489_s9 = smov 0   ;;  %s491_s10 = smov 0  }
   0x5   :  { %s493_s11 = smov 0   ;;  %s495_s12 = smov 0  }
   0x6 LB: > { %s510_s13 = sadd.s32 4294967295, %s469_s12   ;;  %s270_s14 = sadd.s32 4294967294, %s469_s12   ;;  %s469_s12 = sphi %s495_s12, %s716_s12   ;;  %s465_s11 = sphi %s493_s11, %s715_s11   ;;  %s461_s10 = sphi %s491_s10, %s714_s10   ;;  %s457_s9 = sphi %s489_s9, %s713_s9  }
   0x7   : > { %p39_p0 = scmp.ne.s32.totalorder %s461_s10, %s457_s9  ;;  %p693_p1 = scmp.eq.s32.totalorder %s510_s13, 0 }
   0x8   : > { %p90_p3 = scmp.eq.s32.totalorder %s270_s14, 1  ;;  %p271_p5 = scmp.ge.s32.totalorder %s469_s12, 1 }
   0x9   : > { %p519_p4 = por %p693_p1, %p39_p0  ;;  %p97_p7 = scmp.lt.s32.totalorder %s469_s12, 3 }
   0xa   : > { %p524_p6 = por %p90_p3, %p39_p0  ;;  %s471_s18 = smov [#allocation5]  }
   0xb   : > { %s696_s15 = scalar_select %p519_p4, 1, 0 }
   0xc   : > { %s697_s16 = scalar_select %p524_p6, 1, 0 }
   0xd   : > { %p529_p8 = pnand %p271_p5, %p97_p7  ;;  %s110_s19 = sshll.u32 %s471_s18, 4  ;;  %s111_s19 = int_to_ptr.vmem [resolvable:$true] %s110_s19 }
   0xe   : > { %s537_s20 = sadd.s32 1, %s469_s12   ;;  %s26_s24 = sadd.s32 1, %s465_s11 }
   0xf   : > { %s698_s17 = scalar_select %p529_p8, 1, 0 }
  0x10   : > { %p292_p10 = pneg %p529_p8  ;;  %s23_s22 = ssub.s32 %s469_s12, %s537_s20 }
  0x11   : > { %p547_p12 = scmp.eq.s32.totalorder %s23_s22, 0  ;;  %s341_s27 = scalar_lea.hbm %s691_s1, 128 }
  0x12   : > { %p541_p11 = pnand %p292_p10, %p693_p1  ;;  %p342_p0 = scmp.ne.s32.totalorder %s691_s1, %s341_s27 }
  0x13   : > { %s700_s23 = scalar_select %p547_p12, 1, 0 }
  0x14   : > { %p343_p3 = pneg %p541_p11  ;;  %p348_p10 = scmp.lt.u32.totalorder %s341_s27, %s691_s1 }
  0x16   : > { %p344_p5 = pnand %p343_p3, %p342_p0 }
  0x18   : > { %p345_p7 = pneg %p344_p5 }
  0x1a   : > { %p350_p9 = pnand %p348_p10, %p345_p7 }
  0x1c   : > { %353 = shalt.err (!%p350_p9)
}
  0x1d   : > { %s354_s4 = scalar_lea.vmem %s111_s19, 128  ;;  %p362_p6 = scmp.lt.s32.totalorder %s111_s19, %s111_s19 }
  0x1e   : > { %p355_p1 = scmp.ne.s32.totalorder %s111_s19, %s354_s4  ;;  %p363_p4 = scmp.lt.s32.totalorder %s354_s4, %s354_s4 }
  0x20   : > { %p357_p2 = pnand %p355_p1, %p343_p3  ;;  %p364_p8 = por %p363_p4, %p362_p6 }
  0x22   : > { %p358_p13 = pneg %p357_p2 }
  0x24   : > { %p365_p12 = pnand %p364_p8, %p358_p13 }
  0x26   : > { %368 = shalt.err (!%p365_p12)
}
  0x27   : > { %295 = dma.hbm_to_vmem [thread:$0]  (!%p541_p11), %s691_s1, 128, %s111_s19, [#allocation6]  }
  0x28   : > { %p701_p1 = scmp.ne.s32.totalorder %s700_s23, 0  ;;  %p34_p2 = scmp.eq.s32.totalorder %s469_s12, 0 }
  0x29   : > { %p702_p4 = scmp.ne.s32.totalorder %s465_s11, %s461_s10  ;;  %p703_p6 = scmp.eq.s32.totalorder %s510_s13, 1 }
  0x2a   : > { %s573_s7 = scalar_select %p701_p1, %s465_s11, %s26_s24  }
  0x2b   : > { %p581_p8 = por %p703_p6, %p702_p4  ;;  %p305_p9 = scmp.lt.s32.totalorder %s469_s12, 2 }
  0x2c   : > { %s121_s14 = sand.u32 1, %s465_s11   ;;  %p705_p12 = pmov %p702_p4 }
  0x2d   : > { %s274_s18 = sshll.u32 %s121_s14, 3  ;;  %s275_s21 = sshll.u32 %s469_s12, 7 }
  0x2e   : > { %p35_p13 = por %p34_p2, %p705_p12  ;;  %s594_s19 = scalar_lea.hbm %s690_s0, %s275_s21 }
  0x2f   : > { %s125_s23 = scalar_lea.vmem [#allocation2], %s274_s18  ;;  %s122_s27 = scalar_lea.sflag [#allocation3], %s121_s14 }
  0x30   : > { %s132_s24 = sshll.u32 %s125_s23, 4  ;;  %p596_p11 = pnand %p305_p9, %p35_p13  ;;  %s600_s24 = int_to_ptr.vmem [resolvable:$true] %s132_s24 }
  0x31   : > { %s369_s28 = scalar_lea.hbm %s594_s19, 128  ;;  %s374_s3 = scalar_lea.hbm %s690_s0, 256 }
  0x32   : > { %p370_p0 = scmp.ne.s32.totalorder %s594_s19, %s369_s28  ;;  %p371_p3 = pneg %p596_p11 }
  0x33   : > { %p375_p10 = scmp.lt.u32.totalorder %s594_s19, %s690_s0  ;;  %p376_p1 = scmp.lt.u32.totalorder %s374_s3, %s369_s28 }
  0x34   : > { %p372_p5 = pnand %p371_p3, %p370_p0  ;;  %p378_p4 = scmp.lt.u32.totalorder %s369_s28, %s594_s19 }
  0x35   : > { %p377_p2 = por %p376_p1, %p375_p10 }
  0x36   : > { %p373_p7 = pneg %p372_p5 }
  0x37   : > { %p379_p6 = por %p378_p4, %p377_p2 }
  0x39   : > { %p380_p9 = pnand %p379_p6, %p373_p7 }
  0x3b   : > { %383 = shalt.err (!%p380_p9)
}
  0x3c   : > { %s384_s6 = scalar_lea.vmem %s600_s24, 128  ;;  %s472_s14 = smov [#allocation2]  }
  0x3d   : > { %p385_p12 = scmp.ne.s32.totalorder %s600_s24, %s384_s6  ;;  %s389_s18 = sshll.u32 %s472_s14, 4  ;;  %s390_s18 = int_to_ptr.vmem [resolvable:$false] %s389_s18 }
  0x3e   : > { %s391_s21 = scalar_lea.vmem %s390_s18, 256  ;;  %p392_p5 = scmp.lt.s32.totalorder %s600_s24, %s390_s18 }
  0x3f   : > { %p387_p13 = pnand %p385_p12, %p371_p3  ;;  %p393_p10 = scmp.lt.s32.totalorder %s391_s21, %s384_s6 }
  0x41   : > { %p388_p0 = pneg %p387_p13  ;;  %p394_p1 = por %p393_p10, %p392_p5 }
  0x43   : > { %p395_p2 = pnand %p394_p1, %p388_p0 }
  0x45   : > { %398 = shalt.err (!%p395_p2)
}
  0x46   : > { %299 = dma.hbm_to_vmem [thread:$0]  (!%p596_p11), %s594_s19, 128, %s600_s24, %s122_s27  }
  0x47   : > { %p707_p7 = scmp.ne.s32.totalorder %s698_s17, 0 }
  0x48   : > { %s630_s22 = sand.u32 (!%p707_p7), 1, %s461_s10   ;;  %p708_p3 = scmp.ne.s32.totalorder (!%p707_p7), %s696_s15, 0 }
  0x49   : > { %141 = sbr.rel (%p707_p7) target bundleno = 109 (0x6d), region = 28  ;;  %s277_s25 = sshll.u32 (!%p707_p7), %s630_s22, 3 }
  0x4a   : > { %s144_s23 = scalar_lea.sflag (!%p707_p7), [#allocation3], %s630_s22  ;;  %s147_s28 = scalar_lea.vmem (!%p707_p7), [#allocation2], %s277_s25 }
  0x50   : > { %444 = dma.done.wait (%p708_p3), %s144_s23, 128  }
  0x51   : > { %446 = vsyncadd (%p708_p3), %s144_s23, 4294967168  ;;  %p709_p4 = scmp.eq.s32.totalorder %s510_s13, 0 }
  0x53   : > { %448 = dma.done.wait (%p709_p4), [#allocation6], 128   ;;  %p710_p11 = pmov %p709_p4 }
  0x54   : > { %s171_s17 = scalar_lea.vmem [#allocation7], %s277_s25  ;;  %s281_s24 = sshll.u32 %s510_s13, 7  ;;  %v172_v0 = vld [vmem:[%s147_s28] sm:$0xff]  ;;  %v173_v1 = vld [vmem:[#allocation5] sm:$0xff] }
  0x55   : > { %450 = vsyncadd (%p710_p11), [#allocation6], 4294967168  ;;  %s190_s19 = sshll.u32 %s171_s17, 4  ;;  %v174_v2 = vmul.f32 %v173_v1, %v172_v0  ;;  %s648_s27 = scalar_lea.hbm %s692_s2, %s281_s24  ;;  %s643_s19 = int_to_ptr.vmem [resolvable:$true] %s190_s19 }
  0x56   : > { %s177_s29 = scalar_lea.sflag [#allocation4], %s630_s22  ;;  %s399_s30 = scalar_lea.vmem %s643_s19, 128 }
  0x57   : > { %175 = vst [vmem:[%s171_s17] sm:$0xff] %v174_v2  ;;  %p400_p6 = scmp.ne.s32.totalorder %s643_s19, %s399_s30  ;;  %s473_s13 = smov [#allocation7]  }
  0x58   : > { %s403_s3 = sshll.u32 %s473_s13, 4  ;;  %s404_s3 = int_to_ptr.vmem [resolvable:$false] %s403_s3 }
  0x59   : > { %p401_p9 = pnand %p400_p6, %p581_p8  ;;  %s405_s4 = scalar_lea.vmem %s404_s3, 256 }
  0x5a   : > { %p406_p13 = scmp.lt.s32.totalorder %s643_s19, %s404_s3  ;;  %p407_p0 = scmp.lt.s32.totalorder %s405_s4, %s399_s30 }
  0x5b   : > { %p402_p12 = pneg %p401_p9 }
  0x5c   : > { %p408_p5 = por %p407_p0, %p406_p13 }
  0x5e   : > { %p409_p10 = pnand %p408_p5, %p402_p12 }
  0x60   : > { %412 = shalt.err (!%p409_p10)
}
  0x61   : > { %s413_s5 = scalar_lea.hbm %s648_s27, 128  ;;  %s417_s18 = scalar_lea.hbm %s692_s2, 256 }
  0x62   : > { %p414_p1 = scmp.ne.s32.totalorder %s648_s27, %s413_s5  ;;  %p418_p3 = scmp.lt.u32.totalorder %s648_s27, %s692_s2 }
  0x63   : > { %p419_p4 = scmp.lt.u32.totalorder %s417_s18, %s413_s5  ;;  %p421_p6 = scmp.lt.u32.totalorder %s413_s5, %s648_s27 }
  0x64   : > { %p415_p2 = pnand %p414_p1, %p581_p8 }
  0x65   : > { %p420_p11 = por %p419_p4, %p418_p3 }
  0x66   : > { %p416_p7 = pneg %p415_p2 }
  0x67   : > { %p422_p9 = por %p421_p6, %p420_p11 }
  0x69   : > { %p423_p12 = pnand %p422_p9, %p416_p7 }
  0x6b   : > { %426 = shalt.err (!%p423_p12)
}
  0x6c   : > { %290 = dma.vmem_to_hbm [thread:$0]  (%p581_p8), %s643_s19, 128, %s648_s27, %s177_s29  }
  0x6d PF: > { %s202_s25 = sand.u32 1, %s457_s9   ;;  %p711_p13 = scmp.ne.s32.totalorder %s697_s16, 0 }
  0x6e   : > { %p712_p0 = scmp.ge.s32.totalorder %s469_s12, 2  ;;  %s203_s23 = scalar_lea.sflag [#allocation4], %s202_s25 }
  0x70   : > { %p301_p5 = pnand %p712_p0, %p711_p13 }
  0x72   : > { %452 = dma.done.wait (!%p301_p5), %s203_s23, 128  }
  0x73   : > { %454 = vsyncadd (!%p301_p5), %s203_s23, 4294967168  ;;  %p16_p10 = scmp.ge.s32.totalorder %s537_s20, 4   ;;  %s713_s9 = smov %s461_s10 }
  0x74   : > { %s714_s10 = smov %s465_s11  ;;  %s715_s11 = smov %s573_s7 }
  0x75   : > { %s716_s12 = smov %s537_s20  ;;  %18 = sbr.rel (!%p16_p10) target bundleno = 6 (0x6), region = 77 }
  0x7c   :  { %208 = vsyncpa [#allocation3], 1 }
  0x7d   :  { %210 = vsyncpa [#allocation3 + $0x1], 1 }
  0x7e   :  { %211 = vsyncpa [#allocation6], 1 }
  0x7f   :  { %212 = vsyncpa [#allocation4], 1 }
  0x80   :  { %214 = vsyncpa [#allocation4 + $0x1], 1 }

</bundles_post_ra>
